<compile_context>
chip_gen: v7x
topology: tpu7x:2x2x1
jax: 0.10.0
libtpu: 0.0.40
codegen_flags: <defaults>
</compile_context>

<pallas_src>
import math

import jax
import jax.numpy as jnp
from jax.experimental import pallas as pl
from jax.experimental.pallas import tpu as pltpu

_LANES = 128
_SUBLANES = 8


def _round_up(n: int, m: int) -> int:
    return (n + m - 1) // m * m


def make_sinusoidal_pe(channels: int, spatial_size) -> jnp.ndarray:
    """Replicates SinusoidalPositionalEmbedding.__init__ buffer `pe`.

    Returns pe of shape (1, channels, *spatial_size), float32.
    """
    assert channels % 2 == 0, "channels must be even (cat(cos, sin) along dim 1)"
    spatial_dims = len(spatial_size)
    freqs = jnp.exp(
        jnp.arange(0, channels, 2, dtype=jnp.float32) * (-math.log(10000.0) / channels)
    )  # (channels//2,)
    theta = jnp.zeros((1, channels // 2) + tuple(spatial_size), dtype=jnp.float32)
    for dim, size in enumerate(spatial_size):
        p_size = [size if j == dim else 1 for j in range(spatial_dims)]
        x = jnp.arange(size, dtype=jnp.float32).reshape((1, 1, *p_size))
        omega = freqs.reshape((1, -1) + (1,) * spatial_dims)
        theta = theta + omega * x
    cos_pe = jnp.cos(theta)
    sin_pe = jnp.sin(theta)
    pe = jnp.concatenate((cos_pe, sin_pe), axis=1)  # (1, channels, *spatial_size)
    return pe


def _add_pe_kernel(x_ref, pe_ref, o_ref):
    # x_ref/o_ref: (b_blk, tile_s, 128); pe_ref: (1, tile_s, 128), same dtype as x.
    x = x_ref[...]
    pe = jnp.broadcast_to(pe_ref[...], x.shape)
    o_ref[...] = (x + pe).astype(o_ref.dtype)


def sinusoidal_pos_embed_forward(
    x: jnp.ndarray,
    pe: jnp.ndarray,
    *,
    tile_sublanes: int = 2048,
    small_fallback_bytes: int = 1 << 20,
    force_pallas: bool = False,
    donate_x: bool = False,
) -> jnp.ndarray:
    """out = x + pe, broadcast over batch. x: (B, C, *spatial), pe: (1, C, *spatial)."""
    B = x.shape[0]
    feat_shape = x.shape[1:]
    assert pe.shape == (1,) + tuple(feat_shape), (pe.shape, x.shape)

    # Cast the __init__ buffer to the activation dtype once (amortized to zero in a real
    # model where the buffer is stored in the model dtype).
    pe = pe.astype(x.dtype)

    # Small-tensor fallback: at a few KiB a fused XLA add beats the pallas_call boundary.
    if (not force_pallas) and x.size * x.dtype.itemsize <= small_fallback_bytes:
        return x + pe

    F = math.prod(feat_shape)
    dtype_bytes = x.dtype.itemsize
    pack = max(1, 4 // dtype_bytes)          # sublane packing: 1 (f32), 2 (bf16), 4 (i8/fp8)
    sub_mult = _SUBLANES * pack              # block-height multiple required by the dtype

    # ---- layout plumbing (wrapper only) ------------------------------------------------
    # Flatten features and view as (B, S, 128) so every vreg is lane-dense.  Pad only to a
    # multiple of 128 and only when needed; ragged feature tiles are handled by Pallas.
    x_flat = x.reshape(B, F)
    pe_flat = pe.reshape(1, F)
    F_pad = _round_up(F, _LANES)
    padded = F_pad != F
    if padded:
        x_flat = jnp.pad(x_flat, ((0, 0), (0, F_pad - F)))
        pe_flat = jnp.pad(pe_flat, ((0, 0), (0, F_pad - F)))
    S = F_pad // _LANES
    x3 = x_flat.reshape(B, S, _LANES)
    pe3 = pe_flat.reshape(1, S, _LANES)

    # Feature tile: largest multiple of sub_mult up to tile_sublanes; last tile may be ragged.
    tile_s = min(tile_sublanes, _round_up(S, sub_mult))
    tile_s = max(sub_mult, (tile_s // sub_mult) * sub_mult)
    num_tiles = pl.cdiv(S, tile_s)

    # Fold batch rows into the block within a ~16 MiB double-buffered VMEM budget
    # (x block + out block dominate; pe block is a single row).
    block_row_bytes = tile_s * _LANES * dtype_bytes
    budget = 16 * 1024 * 1024
    b_blk = max(1, min(B, budget // (4 * block_row_bytes)))
    num_b = pl.cdiv(B, b_blk)

    # Grid order: feature tiles outermost (pe block stays VMEM-resident across the inner
    # batch loop).  If there is only one feature tile but several batch blocks, put the
    # batch axis outermost so the v7x megacore still splits work across both TensorCores.
    if num_tiles == 1 and num_b > 1:
        grid = (num_b, num_tiles)
        x_map = lambda b, t: (b, t, 0)
        pe_map = lambda b, t: (0, t, 0)
    else:
        grid = (num_tiles, num_b)
        x_map = lambda t, b: (b, t, 0)
        pe_map = lambda t, b: (0, t, 0)

    out3 = pl.pallas_call(
        _add_pe_kernel,
        out_shape=jax.ShapeDtypeStruct((B, S, _LANES), x.dtype),
        grid_spec=pltpu.PrefetchScalarGridSpec(
            num_scalar_prefetch=0,
            grid=grid,
            in_specs=[
                pl.BlockSpec((b_blk, tile_s, _LANES), x_map),
                pl.BlockSpec((1, tile_s, _LANES), pe_map),  # pe: one row, broadcast in-kernel
            ],
            out_specs=pl.BlockSpec((b_blk, tile_s, _LANES), x_map),
        ),
        compiler_params=pltpu.CompilerParams(
            dimension_semantics=("parallel", "parallel"),
        ),
        # Only enable donation when the caller no longer needs x (saves a full-size HBM
        # output allocation; bytes streamed are unchanged).
        input_output_aliases=({0: 0} if donate_x else {}),
    )(x3, pe3)

    if padded:
        out = out3.reshape(B, F_pad)[:, :F].reshape(x.shape)
    else:
        out = out3.reshape(x.shape)
    return out


if __name__ == "__main__":
    key = jax.random.PRNGKey(0)

    # 1) Module-nominal small shape (batch=2, channels=4, spatial=(16,16)); Pallas forced
    #    so the kernel is exercised even though the fallback would normally handle it.
    B, C, H, W = 2, 4, 16, 16
    k1, k2, k3 = jax.random.split(key, 3)
    x = jax.random.normal(k1, (B, C, H, W), dtype=jnp.float32)
    pe = make_sinusoidal_pe(C, (H, W))
    out = jax.block_until_ready(sinusoidal_pos_embed_forward(x, pe, force_pallas=True))
    ref = x + pe
    assert out.shape == (B, C, H, W)
    assert jnp.allclose(out, ref, atol=1e-6, rtol=1e-6)

    # Fallback path (plain fused add) for the same tiny input.
    out_fb = jax.block_until_ready(sinusoidal_pos_embed_forward(x, pe))
    assert jnp.allclose(out_fb, ref, atol=1e-6, rtol=1e-6)

    # 2) Non-128-aligned feature count -> exercises the pad + ragged-tile path.
    B2, C2, H2, W2 = 2, 6, 20, 20
    x2 = jax.random.normal(k2, (B2, C2, H2, W2), dtype=jnp.float32)
    pe2 = make_sinusoidal_pe(C2, (H2, W2))
    out2 = jax.block_until_ready(sinusoidal_pos_embed_forward(x2, pe2, force_pallas=True))
    ref2 = x2 + pe2
    assert out2.shape == (B2, C2, H2, W2)
    assert jnp.allclose(out2, ref2, atol=1e-6, rtol=1e-6)

    # 3) bf16 activations -> exercises the pe dtype cast and dtype-aware sublane rounding.
    B3, C3, H3, W3 = 2, 16, 16, 16
    x3 = jax.random.normal(k3, (B3, C3, H3, W3), dtype=jnp.bfloat16)
    pe3 = make_sinusoidal_pe(C3, (H3, W3))
    out3 = jax.block_until_ready(sinusoidal_pos_embed_forward(x3, pe3, force_pallas=True))
    ref3 = x3 + pe3.astype(jnp.bfloat16)
    assert out3.shape == (B3, C3, H3, W3)
    assert jnp.allclose(
        out3.astype(jnp.float32), ref3.astype(jnp.float32), atol=1e-2, rtol=1e-2
    )

    print("KERNEL_OK")
</pallas_src>

<mosaic_0001>
module attributes {stable_mosaic.version = 11 : i64} {
  func.func @_add_pe_kernel(%arg0: i32, %arg1: i32, %arg2: memref<2x8x128xf32, #tpu.memory_space<vmem>>, %arg3: memref<1x8x128xf32, #tpu.memory_space<vmem>>, %arg4: memref<2x8x128xf32, #tpu.memory_space<vmem>>) attributes {dimension_semantics = [#tpu.dimension_semantics<parallel>, #tpu.dimension_semantics<parallel>], iteration_bounds = array<i64: 1, 1>, scalar_prefetch = 0 : i64, scratch_operands = 0 : i64, tpu.core_type = #tpu.core_type<tc>, window_params = [{transform_indices = @transform_0, window_bounds = array<i64: 2, 8, 128>}, {transform_indices = @transform_1, window_bounds = array<i64: 1, 8, 128>}, {transform_indices = @transform_2, window_bounds = array<i64: 2, 8, 128>}]} {
    %c0 = arith.constant 0 : index
    %c0_0 = arith.constant 0 : index
    %c0_1 = arith.constant 0 : index
    %0 = vector.load %arg2[%c0, %c0_0, %c0_1] : memref<2x8x128xf32, #tpu.memory_space<vmem>>, vector<2x8x128xf32>
    %c0_2 = arith.constant 0 : index
    %c0_3 = arith.constant 0 : index
    %c0_4 = arith.constant 0 : index
    %1 = vector.load %arg3[%c0_2, %c0_3, %c0_4] : memref<1x8x128xf32, #tpu.memory_space<vmem>>, vector<1x8x128xf32>
    %2 = vector.shape_cast %1 : vector<1x8x128xf32> to vector<1x8x128xf32>
    %3 = vector.broadcast %2 : vector<1x8x128xf32> to vector<2x8x128xf32>
    %4 = arith.addf %0, %3 : vector<2x8x128xf32>
    %c0_5 = arith.constant 0 : index
    %c0_6 = arith.constant 0 : index
    %c0_7 = arith.constant 0 : index
    %5 = vector.load %arg4[%c0_5, %c0_6, %c0_7] : memref<2x8x128xf32, #tpu.memory_space<vmem>>, vector<2x8x128xf32>
    tpu.vector_store %arg4[%c0_5, %c0_6, %c0_7], %4 {strides = array<i32>} : memref<2x8x128xf32, #tpu.memory_space<vmem>>, vector<2x8x128xf32>,
    return
  }
  func.func @transform_0(%arg0: i32, %arg1: i32) -> (i32, i32, i32) {
    %c0_i32 = arith.constant 0 : i32
    %c0_i32_0 = arith.constant 0 : i32
    return %arg1, %arg0, %c0_i32 : i32, i32, i32
  }
  func.func @transform_1(%arg0: i32, %arg1: i32) -> (i32, i32, i32) {
    %c0_i32 = arith.constant 0 : i32
    %c0_i32_0 = arith.constant 0 : i32
    %c0_i32_1 = arith.constant 0 : i32
    return %c0_i32, %arg0, %c0_i32_0 : i32, i32, i32
  }
  func.func @transform_2(%arg0: i32, %arg1: i32) -> (i32, i32, i32) {
    %c0_i32 = arith.constant 0 : i32
    %c0_i32_0 = arith.constant 0 : i32
    return %arg1, %arg0, %c0_i32 : i32, i32, i32
  }
}

</mosaic_0001>

<bundles_post_ra>
// kernel: tpu_custom_call.1
= control target key start
LH: loop header
LB: loop body
LE: loop exit
PB: predicated region body
PF: predicated region fallthrough
CT: control target
= control target key end

     0   :  { %7 = vsyncpa [#allocation3], 0  ;;  %s202_s0 = inlined_call_operand.hbm [shape: f32[2,8,128], index: 0, kind: input, shape index: {}]   ;;  %s203_s1 = inlined_call_operand.hbm [shape: f32[1,8,128], index: 1, kind: input, shape index: {}]   ;;  %s204_s2 = inlined_call_operand.hbm [shape: f32[2,8,128], index: 2, kind: output, shape index: {}]  }
   0x1   :  { %8 = vsyncpa [#allocation6], 0 }
   0x2   :  { %9 = vsyncpa [#allocation4], 0  ;;  %s140_s9 = smov [#allocation2]   ;;  %s68_s13 = scalar_lea.hbm %s202_s0, 256 }
   0x3   :  { %s15_s10 = sshll.u32 %s140_s9, 4  ;;  %p69_p0 = scmp.ne.s32.totalorder %s202_s0, %s68_s13  ;;  %s16_s10 = int_to_ptr.vmem [resolvable:$true] %s15_s10 }
   0x4   :  { %p72_p1 = scmp.lt.u32.totalorder %s68_s13, %s202_s0 }
   0x6   :  { %p74_p2 = pnand %p72_p1, %p69_p0 }
   0x8   :  { %77 = shalt.err (!%p74_p2)
}
   0x9   :  { %s78_s18 = scalar_lea.vmem %s16_s10, 256  ;;  %p83_p4 = scmp.lt.s32.totalorder %s16_s10, %s16_s10 }
   0xa   :  { %p79_p3 = scmp.ne.s32.totalorder %s16_s10, %s78_s18  ;;  %p84_p5 = scmp.lt.s32.totalorder %s78_s18, %s78_s18 }
   0xc   :  { %p85_p6 = por %p84_p5, %p83_p4 }
   0xe   :  { %p86_p7 = pnand %p85_p6, %p79_p3 }
  0x10   :  { %89 = shalt.err (!%p86_p7)
}
  0x11   :  { %s141_s19 = smov 128   ;;  %s142_s20 = smov 8  }
  0x12   :  { %21 = dma.hbm_to_vmem [thread:$0]  %s202_s0, 256, %s16_s10, [#allocation3], %s141_s19, %s141_s19, %s142_s20  }
  0x13   :  { %s143_s23 = smov [#allocation5]   ;;  %s90_s27 = scalar_lea.hbm %s203_s1, 128 }
  0x14   :  { %s28_s24 = sshll.u32 %s143_s23, 4  ;;  %p91_p8 = scmp.ne.s32.totalorder %s203_s1, %s90_s27  ;;  %s29_s24 = int_to_ptr.vmem [resolvable:$true] %s28_s24 }
  0x15   :  { %p94_p9 = scmp.lt.u32.totalorder %s90_s27, %s203_s1 }
  0x17   :  { %p96_p10 = pnand %p94_p9, %p91_p8 }
  0x19   :  { %99 = shalt.err (!%p96_p10)
}
  0x1a   :  { %s100_s4 = scalar_lea.vmem %s29_s24, 128  ;;  %p105_p12 = scmp.lt.s32.totalorder %s29_s24, %s29_s24 }
  0x1b   :  { %p101_p11 = scmp.ne.s32.totalorder %s29_s24, %s100_s4  ;;  %p106_p13 = scmp.lt.s32.totalorder %s100_s4, %s100_s4 }
  0x1d   :  { %p107_p0 = por %p106_p13, %p105_p12 }
  0x1f   :  { %p108_p1 = pnand %p107_p0, %p101_p11 }
  0x21   :  { %111 = shalt.err (!%p108_p1)
}
  0x22   :  { %31 = dma.hbm_to_vmem [thread:$0]  %s203_s1, 128, %s29_s24, [#allocation6]  }
  0x23   :  { %134 = dma.done.wait [#allocation3], 256  }
  0x24   :  { %135 = vsyncadd [#allocation3], 4294967040 }
  0x25   :  { %136 = dma.done.wait [#allocation6], 128  }
  0x26   :  { %137 = vsyncadd [#allocation6], 4294967168  ;;  %s144_s6 = smov [#allocation7]   ;;  %v38_v0 = vld [vmem:[#allocation2] sm:$0xff]  ;;  %v40_v1 = vld [vmem:[#allocation5] sm:$0xff] }
  0x27   :  { %s50_s7 = sshll.u32 %s144_s6, 4  ;;  %v39_v2 = vld [vmem:[#allocation2 + $0x8] sm:$0xff]  ;;  %v41_v3 = vadd.f32 %v40_v1, %v38_v0  ;;  %s51_s7 = int_to_ptr.vmem [resolvable:$true] %s50_s7 }
  0x28   :  { %v42_v4 = vadd.f32 %v40_v1, %v39_v2  ;;  %s112_s8 = scalar_lea.vmem %s51_s7, 256  ;;  %p117_p3 = scmp.lt.s32.totalorder %s51_s7, %s51_s7 }
  0x29   :  { %43 = vst [vmem:[#allocation7] sm:$0xff] %v41_v3  ;;  %p113_p2 = scmp.ne.s32.totalorder %s51_s7, %s112_s8  ;;  %p118_p4 = scmp.lt.s32.totalorder %s112_s8, %s112_s8 }
  0x2a   :  { %44 = vst [vmem:[#allocation7 + $0x8] sm:$0xff] %v42_v4 }
  0x2b   :  { %p119_p5 = por %p118_p4, %p117_p3 }
  0x2d   :  { %p120_p6 = pnand %p119_p5, %p113_p2 }
  0x2f   :  { %123 = shalt.err (!%p120_p6)
}
  0x30   :  { %s124_s10 = scalar_lea.hbm %s204_s2, 256 }
  0x31   :  { %p125_p7 = scmp.ne.s32.totalorder %s204_s2, %s124_s10  ;;  %p128_p8 = scmp.lt.u32.totalorder %s124_s10, %s204_s2 }
  0x33   :  { %p130_p9 = pnand %p128_p8, %p125_p7 }
  0x35   :  { %133 = shalt.err (!%p130_p9)
}
  0x36   :  { %56 = dma.vmem_to_hbm [thread:$0]  %s51_s7, 256, %s204_s2, [#allocation4], %s141_s19, %s141_s19, %s142_s20  }
  0x37   :  { %138 = dma.done.wait [#allocation4], 256  }
  0x38   :  { %139 = vsyncadd [#allocation4], 4294967040 }
  0x39   :  { %60 = vsyncpa [#allocation3], 1 }
  0x3a   :  { %61 = vsyncpa [#allocation6], 1 }
  0x3b   :  { %62 = vsyncpa [#allocation4], 1 }

</bundles_post_ra>
